<compile_context>
chip_gen: v6e
topology: v6e:2x2x1
jax: 0.10.0
libtpu: 0.0.40
codegen_flags: <defaults>
</compile_context>

<pallas_src>
import functools
import math

import numpy as np
import jax
import jax.numpy as jnp
from jax import lax
from jax.experimental import pallas as pl
from jax.experimental.pallas import tpu as pltpu


def _div_term(d_model):
    # Host-side float64, cast once to f32 -> identical constants for kernel and reference.
    return np.exp(np.arange(d_model, dtype=np.float64)
                  * (-math.log(10000.0) / d_model)).astype(np.float32)


def make_pe(d_model, max_len=5000, dtype=jnp.float32):
    """Reference pe table; mirrors PositionalEncoding.__init__ exactly."""
    position = jnp.arange(max_len, dtype=jnp.float32)[:, None]          # [L,1]
    w = jnp.asarray(_div_term(d_model))[None, :]                        # [1,D]
    pe = jnp.sin(position * w) + jnp.cos(position * w)                  # [L,D]
    return pe[:, None, :].astype(dtype)                                 # [L,1,D]


def _choose_tile_rows(R, row_bytes, target_bytes=2 << 20):
    """Rows per block: ~2 MiB per stream (2 streams x 2 buffers ~= 8 MiB),
    multiple of 8; split big single-block cases so v7x's 2 TCs both work."""
    if R <= 8:
        return R
    rows = max(8, (target_bytes // max(1, row_bytes)) // 8 * 8)
    if rows >= R:
        if R * row_bytes > (1 << 20):           # big enough to matter -> >=2 steps
            return max(8, ((R // 2) // 8) * 8)
        return R
    return rows


def _pe_eval_kernel(x_ref, w_ref, soff_ref, o_ref, *, group, pos):
    # pe computed on the fly (EUP sin/cos); eval dropout = identity.
    TR, C = x_ref.shape
    ridx = lax.broadcasted_iota(jnp.int32, (TR, C), 0)
    base = pl.program_id(0) * TR
    # position p = pos + s, where s = (global_row)*group + per-lane offset
    p = ((base + ridx) * group + pos).astype(jnp.float32) + soff_ref[...]
    arg = p * w_ref[...]
    pe = jnp.sin(arg) + jnp.cos(arg)
    o_ref[...] = (x_ref[...].astype(jnp.float32) + pe).astype(o_ref.dtype)


def _pe_train_kernel(seed_ref, x_ref, w_ref, soff_ref, o_ref,
                     *, group, pos, threshold, scale):
    # TODO(synk): cannot bit-match torch.nn.Dropout's RNG stream; the mask here is a
    # counter-based hash of (seed, global element index) -- distributionally equivalent,
    # tile/grid/core independent.
    TR, C = x_ref.shape
    ridx = lax.broadcasted_iota(jnp.int32, (TR, C), 0)
    lidx = lax.broadcasted_iota(jnp.int32, (TR, C), 1)
    base = pl.program_id(0) * TR

    p = ((base + ridx) * group + pos).astype(jnp.float32) + soff_ref[...]
    arg = p * w_ref[...]
    y = x_ref[...].astype(jnp.float32) + jnp.sin(arg) + jnp.cos(arg)

    # lowbias32-style integer hash of the global flat element id (uint32, wraps).
    flat = ((base + ridx) * C + lidx).astype(jnp.uint32)
    h = flat + seed_ref[0].astype(jnp.uint32)
    h = h ^ (h >> 16)
    h = h * jnp.uint32(0x7FEB352D)
    h = h ^ (h >> 15)
    h = h * jnp.uint32(0x846CA68B)
    h = h ^ (h >> 16)
    keep = h >= jnp.uint32(threshold)           # P(drop) = threshold / 2^32 ~= p
    o_ref[...] = jnp.where(keep, y * scale, 0.0).astype(o_ref.dtype)


def positional_encoding(x, pos=0, *, p=0.1, training=False, seed=0):
    """x: [S, B, D] (seq, batch, d_model).  `pos` must be a static Python int
    (TranAD always passes a literal)."""
    S, B, D = x.shape
    BD = B * D

    # Group g consecutive sequence positions per row so the row width g*B*D is a
    # multiple of 128 (lane-dense, unmasked vst); fall back to g=1 when impossible.
    m = 128 // math.gcd(BD, 128)
    g = m if (m > 1 and S % m == 0) else 1
    C = g * BD
    R = S // g
    x2 = x.reshape(R, C)                                   # contiguous -> free bitcast

    # Tiny per-lane constant rows (KB-scale): angular frequency and seq offset-in-group.
    w_row = jnp.asarray(np.tile(_div_term(D), B * g)[None, :], dtype=jnp.float32)        # (1, C)
    soff_row = jnp.asarray(np.repeat(np.arange(g, dtype=np.float32), BD)[None, :])        # (1, C)

    itemsize = jnp.dtype(x.dtype).itemsize
    TR = _choose_tile_rows(R, C * itemsize)
    grid = (pl.cdiv(R, TR),)
    out_shape = jax.ShapeDtypeStruct((R, C), x.dtype)

    # Only raise the scoped-VMEM limit when the chosen blocks actually need it
    # (stay well under v7x's 64 MiB physical VMEM).
    block_bytes = TR * C * itemsize
    needed = 4 * block_bytes + 4 * C * 4 + (1 << 20)       # 2 streams x 2 buffers + rows + slack
    vmem_limit = int(min(2 * needed, 60 << 20)) if needed > (12 << 20) else None
    cparams = pltpu.CompilerParams(dimension_semantics=("parallel",),
                                   vmem_limit_bytes=vmem_limit)

    if (not training) or p == 0.0:
        out = pl.pallas_call(
            functools.partial(_pe_eval_kernel, group=g, pos=int(pos)),
            grid_spec=pltpu.PrefetchScalarGridSpec(
                num_scalar_prefetch=0,
                grid=grid,
                in_specs=[pl.BlockSpec((TR, C), lambda i: (i, 0)),
                          pl.BlockSpec((1, C), lambda i: (0, 0)),
                          pl.BlockSpec((1, C), lambda i: (0, 0))],
                out_specs=pl.BlockSpec((TR, C), lambda i: (i, 0))),
            out_shape=out_shape,
            compiler_params=cparams,
        )(x2, w_row, soff_row)
        return out.reshape(S, B, D)

    # Integer dropout threshold baked in at trace time (no per-element converts).
    threshold = min(int(round(float(p) * float(1 << 32))), (1 << 32) - 1)
    scale = 1.0 / (1.0 - float(p))
    kernel = functools.partial(_pe_train_kernel, group=g, pos=int(pos),
                               threshold=threshold, scale=scale)
    seed_arr = jnp.array([seed], dtype=jnp.int32)
    out = pl.pallas_call(
        kernel,
        grid_spec=pltpu.PrefetchScalarGridSpec(
            num_scalar_prefetch=1,
            grid=grid,
            # index_maps receive the scalar-prefetch ref as a trailing arg
            in_specs=[pl.BlockSpec((TR, C), lambda i, s: (i, 0)),
                      pl.BlockSpec((1, C), lambda i, s: (0, 0)),
                      pl.BlockSpec((1, C), lambda i, s: (0, 0))],
            out_specs=pl.BlockSpec((TR, C), lambda i, s: (i, 0))),
        out_shape=out_shape,
        compiler_params=cparams,
    )(seed_arr, x2, w_row, soff_row)
    return out.reshape(S, B, D)


if __name__ == "__main__":
    key = jax.random.PRNGKey(0)
    S, B, D = 8, 2, 32          # seq_len, batch, d_model
    MAX_LEN = 64

    x = jax.random.normal(key, (S, B, D), dtype=jnp.float32)
    pe = make_pe(D, max_len=MAX_LEN)

    # eval forward (dropout = identity); lane-dense path (g*B*D = 128 here)
    out = jax.block_until_ready(positional_encoding(x, pos=0, training=False))
    ref = x + pe[0:S, :, :]
    assert out.shape == x.shape and out.dtype == x.dtype
    assert jnp.allclose(out, ref, atol=1e-4, rtol=1e-4)

    # non-zero (static) pos
    out_pos = jax.block_until_ready(positional_encoding(x, pos=3, training=False))
    assert jnp.allclose(out_pos, x + pe[3:3 + S, :, :], atol=1e-4, rtol=1e-4)

    # fallback path (B*D not 128-alignable within S): still correct
    x3 = jax.random.normal(jax.random.PRNGKey(1), (6, 3, 20), dtype=jnp.float32)
    pe3 = make_pe(20, max_len=MAX_LEN)
    out3 = jax.block_until_ready(positional_encoding(x3, pos=1, training=False))
    assert jnp.allclose(out3, x3 + pe3[1:1 + 6, :, :], atol=1e-4, rtol=1e-4)

    # training forward: every element is either dropped to 0 or scaled by 1/(1-p)
    p = 0.1
    out_tr = jax.block_until_ready(
        positional_encoding(x, pos=0, p=p, training=True, seed=123))
    scaled = ref * (1.0 / (1.0 - p))
    ok = jnp.isclose(out_tr, 0.0, atol=1e-6) | jnp.isclose(out_tr, scaled, atol=1e-4, rtol=1e-4)
    assert out_tr.shape == x.shape and bool(jnp.all(ok))

    print("KERNEL_OK")
</pallas_src>

<mosaic_0001>
module attributes {stable_mosaic.version = 11 : i64} {
  func.func @_pe_eval_kernel(%arg0: i32, %arg1: memref<4x128xf32, #tpu.memory_space<vmem>>, %arg2: memref<1x128xf32, #tpu.memory_space<vmem>>, %arg3: memref<1x128xf32, #tpu.memory_space<vmem>>, %arg4: memref<4x128xf32, #tpu.memory_space<vmem>>) attributes {dimension_semantics = [#tpu.dimension_semantics<parallel>], iteration_bounds = array<i64: 1>, scalar_prefetch = 0 : i64, scratch_operands = 0 : i64, tpu.core_type = #tpu.core_type<tc>, window_params = [{transform_indices = @transform_0, window_bounds = array<i64: 4, 128>}, {pipeline_mode = #tpu.pipeline_mode<synchronous>, transform_indices = @transform_1, window_bounds = array<i64: 1, 128>}, {pipeline_mode = #tpu.pipeline_mode<synchronous>, transform_indices = @transform_2, window_bounds = array<i64: 1, 128>}, {transform_indices = @transform_3, window_bounds = array<i64: 4, 128>}]} {
    %0 = tpu.iota {dimensions = array<i32: 0>} : vector<4x128xi32>
    %c4_i32 = arith.constant 4 : i32
    %1 = arith.muli %arg0, %c4_i32 : i32
    %2 = vector.broadcast %1 : i32 to vector<4x128xi32>
    %3 = arith.addi %2, %0 : vector<4x128xi32>
    %c2_i32 = arith.constant 2 : i32
    %4 = vector.broadcast %c2_i32 : i32 to vector<4x128xi32>
    %5 = arith.muli %3, %4 : vector<4x128xi32>
    %c0_i32 = arith.constant 0 : i32
    %6 = vector.broadcast %c0_i32 : i32 to vector<4x128xi32>
    %7 = arith.addi %5, %6 : vector<4x128xi32>
    %8 = arith.sitofp %7 : vector<4x128xi32> to vector<4x128xf32>
    %c0 = arith.constant 0 : index
    %c0_0 = arith.constant 0 : index
    %9 = vector.load %arg3[%c0, %c0_0] : memref<1x128xf32, #tpu.memory_space<vmem>>, vector<1x128xf32>
    %10 = vector.broadcast %9 : vector<1x128xf32> to vector<4x128xf32>
    %11 = arith.addf %8, %10 : vector<4x128xf32>
    %c0_1 = arith.constant 0 : index
    %c0_2 = arith.constant 0 : index
    %12 = vector.load %arg2[%c0_1, %c0_2] : memref<1x128xf32, #tpu.memory_space<vmem>>, vector<1x128xf32>
    %13 = vector.broadcast %12 : vector<1x128xf32> to vector<4x128xf32>
    %14 = arith.mulf %11, %13 : vector<4x128xf32>
    %15 = math.sin %14 : vector<4x128xf32>
    %16 = math.cos %14 : vector<4x128xf32>
    %17 = arith.addf %15, %16 : vector<4x128xf32>
    %c0_3 = arith.constant 0 : index
    %c0_4 = arith.constant 0 : index
    %18 = vector.load %arg1[%c0_3, %c0_4] : memref<4x128xf32, #tpu.memory_space<vmem>>, vector<4x128xf32>
    %19 = arith.addf %18, %17 : vector<4x128xf32>
    %c0_5 = arith.constant 0 : index
    %c0_6 = arith.constant 0 : index
    %20 = vector.load %arg4[%c0_5, %c0_6] : memref<4x128xf32, #tpu.memory_space<vmem>>, vector<4x128xf32>
    tpu.vector_store %arg4[%c0_5, %c0_6], %19 {strides = array<i32>} : memref<4x128xf32, #tpu.memory_space<vmem>>, vector<4x128xf32>,
    return
  }
  func.func @transform_0(%arg0: i32) -> (i32, i32) {
    %c0_i32 = arith.constant 0 : i32
    %c0_i32_0 = arith.constant 0 : i32
    return %arg0, %c0_i32 : i32, i32
  }
  func.func @transform_1(%arg0: i32) -> (i32, i32) {
    %c0_i32 = arith.constant 0 : i32
    %c0_i32_0 = arith.constant 0 : i32
    %c0_i32_1 = arith.constant 0 : i32
    return %c0_i32, %c0_i32_0 : i32, i32
  }
  func.func @transform_2(%arg0: i32) -> (i32, i32) {
    %c0_i32 = arith.constant 0 : i32
    %c0_i32_0 = arith.constant 0 : i32
    %c0_i32_1 = arith.constant 0 : i32
    return %c0_i32, %c0_i32_0 : i32, i32
  }
  func.func @transform_3(%arg0: i32) -> (i32, i32) {
    %c0_i32 = arith.constant 0 : i32
    %c0_i32_0 = arith.constant 0 : i32
    return %arg0, %c0_i32 : i32, i32
  }
}

</mosaic_0001>

<bundles_post_ra>
// kernel: tpu_custom_call.1
= control target key start
LH: loop header
LB: loop body
LE: loop exit
PB: predicated region body
PF: predicated region fallthrough
CT: control target
= control target key end

     0   :  { %8 = vsyncpa [#allocation3], 0  ;;  %s407_s0 = inlined_call_operand.hbm [shape: f32[4,128], index: 0, kind: input, shape index: {}]   ;;  %s408_s1 = inlined_call_operand.vmem [shape: f32[1,128], index: 1, kind: input, shape index: {}]   ;;  %s409_s2 = inlined_call_operand.vmem [shape: f32[1,128], index: 2, kind: input, shape index: {}]   ;;  %s410_s3 = inlined_call_operand.hbm [shape: f32[4,128], index: 3, kind: output, shape index: {}]  }
   0x1   :  { %9 = vsyncpa [#allocation4], 0  ;;  %s346_s12 = smov [#allocation2]  }
   0x2   :  { %s16_s13 = sshll.u32 %s346_s12, 4  ;;  %s17_s13 = int_to_ptr.vmem [resolvable:$true] %s16_s13 }
   0x3   :  { %s310_s14 = scalar_lea.vmem %s17_s13, 64  ;;  %p315_p1 = scmp.lt.s32.totalorder %s17_s13, %s17_s13 }
   0x4   :  { %p311_p0 = scmp.ne.s32.totalorder %s17_s13, %s310_s14  ;;  %p316_p2 = scmp.lt.s32.totalorder %s310_s14, %s310_s14 }
   0x6   :  { %p317_p3 = por %p316_p2, %p315_p1 }
   0x8   :  { %p318_p4 = pnand %p317_p3, %p311_p0 }
   0xa   :  { %321 = shalt.err (!%p318_p4)
}
   0xb   :  { %19 = dma.hbm_to_vmem [thread:$0]  %s407_s0, 64, %s17_s13, [#allocation3]  }
   0xc   :  { %342 = dma.done.wait [#allocation3], 64  }
   0xd   :  { %343 = vsyncadd [#allocation3], 4294967232  ;;  %v27_v0 = vlaneseq  ;;  %v276_v4 = vld [vmem:[%s409_s2] ss:$0 sm:$0xff]  ;;  %v347_v19 = vmov 683565275  }
   0xe   :  { %v277_v5 = vld [vmem:[%s408_s1] ss:$0 sm:$0xff]  ;;  %v348_v21 = vmov 2475754826   ;;  %v349_v23 = vmov 2131351028  }
   0xf   :  { %v28_v1 = vshrl.u32 %v27_v0, 7  ;;  %v350_v25 = vmov 2102212464   ;;  %v351_v27 = vmov 920167782   ;;  %s353_s0 = smov [#allocation5]  }
  0x10   :  { %v352_v34 = vmov 1326507024   ;;  %s267_s1 = sshll.u32 %s353_s0, 4  ;;  %s268_s1 = int_to_ptr.vmem [resolvable:$true] %s267_s1 }
  0x11   :  { %v32_v2 = vmul.u32 2, %v28_v1  ;;  %s322_s2 = scalar_lea.vmem %s268_s1, 64  ;;  %p327_p6 = scmp.lt.s32.totalorder %s268_s1, %s268_s1 }
  0x12   :  { %p323_p5 = scmp.ne.s32.totalorder %s268_s1, %s322_s2  ;;  %p328_p7 = scmp.lt.s32.totalorder %s322_s2, %s322_s2 }
  0x13   :  { %v33_v3 = vcvt.s32.f32 %v32_v2 }
  0x14   :  { %p329_p8 = por %p328_p7, %p327_p6 }
  0x15   :  { %v41_v6 = vadd.f32 %v276_v4, %v33_v3 }
  0x16   :  { %p330_p9 = pnand %p329_p8, %p323_p5 }
  0x17   :  { %v383_v7 = vmul.f32 %v277_v5, %v41_v6 }
  0x19   :  { %v53_v8 = vand.u32 2139095040, %v383_v7  ;;  %v50_v10 = vand.u32 2147483647, %v383_v7  ;;  %vm52_vm7 = vcmp.lt.s32.totalorder %v383_v7, 0  ;;  %vm142_vm15 = vweird.f32 %v383_v7 }
  0x1b   :  { %v54_v9 = vshrl.u32 %v53_v8, 23  ;;  %v57_v13 = vand.u32 8388607, %v50_v10  ;;  %vm51_vm8 = vcmp.le.f32.partialorder %v50_v10, 0.7853982 }
  0x1d   :  { %v278_v11 = vadd.s32 4294967169, %v54_v9  ;;  %v58_v16 = vor.u32 8388608, %v57_v13 }
  0x1f   :  { %v60_v12 = vadd.s32 1, %v278_v11  ;;  %v98_v36 = vshll.u32 %v58_v16, 8 }
  0x21   :  { %vm61_vm0 = vcmp.gt.s32.totalorder %v60_v12, 0 }
  0x22   :  { %v62_v14 = vsel %vm61_vm0, %v60_v12, 0 }
  0x23   :  { %v64_v15 = vand.u32 31, %v62_v14  ;;  %v63_v17 = vshrl.u32 %v62_v14, 5 }
  0x25   :  { %v65_v18 = vsub.s32 32, %v64_v15  ;;  %v67_v20 = vshll.u32 %v347_v19, %v64_v15  ;;  %v70_v22 = vshll.u32 %v348_v21, %v64_v15  ;;  %v73_v24 = vshll.u32 %v349_v23, %v64_v15 }
  0x26   :  { %v76_v26 = vshll.u32 %v350_v25, %v64_v15  ;;  %v79_v28 = vshll.u32 %v351_v27, %v64_v15  ;;  %vm82_vm1 = vcmp.lt.s32.totalorder %v63_v17, 1  ;;  %vm85_vm2 = vcmp.lt.s32.totalorder %v63_v17, 4 }
  0x27   :  { %v66_v29 = vshrl.u32 %v347_v19, %v65_v18  ;;  %v68_v30 = vshrl.u32 %v348_v21, %v65_v18  ;;  %v71_v31 = vshrl.u32 %v349_v23, %v65_v18  ;;  %v74_v32 = vshrl.u32 %v350_v25, %v65_v18 }
  0x28   :  { %v77_v33 = vshrl.u32 %v351_v27, %v65_v18  ;;  %v80_v35 = vshrl.u32 %v352_v34, %v65_v18  ;;  %vm83_vm3 = vcmp.lt.s32.totalorder %v63_v17, 2  ;;  %vm84_vm4 = vcmp.lt.s32.totalorder %v63_v17, 3 }
  0x29   :  { %v69_v37 = vor.u32 %v68_v30, %v67_v20  ;;  %v72_v38 = vor.u32 %v71_v31, %v70_v22  ;;  %v75_v39 = vor.u32 %v74_v32, %v73_v24 }
  0x2a   :  { %v78_v40 = vor.u32 %v77_v33, %v76_v26  ;;  %v81_v41 = vor.u32 %v80_v35, %v79_v28 }
  0x2b   :  { %v86_v42 = vsel %vm82_vm1, %v66_v29, %v69_v37  ;;  %v87_v43 = vsel %vm85_vm2, %v75_v39, 2102212464  ;;  %v90_v44 = vsel %vm82_vm1, %v69_v37, %v72_v38  ;;  %v94_v45 = vsel %vm82_vm1, %v72_v38, %v75_v39 }
  0x2c   :  { %v88_v46 = vsel %vm84_vm4, %v72_v38, %v87_v43  ;;  %v91_v47 = vsel %vm85_vm2, %v78_v40, 920167782  ;;  %v95_v48 = vsel %vm85_vm2, %v81_v41, 1326507024  ;;  %v258_v41 = vld [vmem:[#allocation2] sm:$0xf] }
  0x2d   :  { %v92_v49 = vsel %vm84_vm4, %v75_v39, %v91_v47  ;;  %v96_v50 = vsel %vm84_vm4, %v78_v40, %v95_v48  ;;  %v89_v51 = vsel %vm83_vm3, %v86_v42, %v88_v46 }
  0x2e   :  { %v93_v52 = vsel %vm83_vm3, %v90_v44, %v92_v49  ;;  %v97_v53 = vsel %vm83_vm3, %v94_v45, %v96_v50  ;;  %v105_v58 = vmul.u32 %v98_v36, %v89_v51 }
  0x2f   :  { %v389_v54 = vmul.u32.u64.low %v98_v36, %v97_v53  ;;  %v390_v55 = vmul.u32.u64.high %v98_v36, %v97_v53, %v389_v54  ;;  %v392_v56 = vmul.u32.u64.low %v98_v36, %v93_v52  ;;  %v393_v57 = vmul.u32.u64.high %v98_v36, %v93_v52, %v392_v56 }
  0x31   :  { %vm107_vm5 = vc.u32 %v390_v55, %v392_v56  ;;  %v108_v59 = vadd.s32 1, %v393_v57  ;;  %v106_v6 = vadd.s32 %v392_v56, %v390_v55 }
  0x33   :  { %v109_v60 = vsel %vm107_vm5, %v108_v59, %v393_v57 }
  0x34   :  { %v110_v61 = vadd.s32 %v109_v60, %v105_v58 }
  0x36   :  { %v111_v62 = vadd.s32 536870912, %v110_v61 }
  0x38   :  { %v112_v63 = vshrl.u32 %v111_v62, 30 }
  0x3a   :  { %v113_v0 = vshll.u32 %v112_v63, 30  ;;  %v136_v21 = vsub.s32 4, %v112_v63 }
  0x3c   :  { %v114_v1 = vsub.s32 %v110_v61, %v113_v0  ;;  %v137_v24 = vsel %vm52_vm7, %v136_v21, %v112_v63 }
  0x3d   :  { %v139_v26 = vsel %vm51_vm8, 0, %v137_v24 }
  0x3e   :  { %v116_v2 = vsub.s32 0, %v114_v1  ;;  %v143_v27 = vadd.s32 3, %v139_v26  ;;  %v247_v29 = vand.u32 3, %v139_v26 }
  0x40   :  { %v279_v3 = vmin.u32 %v116_v2, %v114_v1  ;;  %v144_v28 = vand.u32 3, %v143_v27  ;;  %vm252_vm10 = vcmp.eq.s32.totalorder %v247_v29, 2  ;;  %vm249_vm12 = vcmp.eq.s32.totalorder %v247_v29, 0 }
  0x41   :  { %vm248_vm14 = vcmp.lt.s32.totalorder %v247_v29, 2 }
  0x42   :  { %v118_v4 = vclz %v279_v3  ;;  %vm149_vm9 = vcmp.eq.s32.totalorder %v144_v28, 2  ;;  %vm146_vm11 = vcmp.eq.s32.totalorder %v144_v28, 0  ;;  %vm145_vm13 = vcmp.lt.s32.totalorder %v144_v28, 2 }
  0x44   :  { %v280_v5 = vadd.s32 4294967294, %v118_v4 }
  0x46   :  { %vm281_vm6 = vcmp.lt.s32.totalorder %v280_v5, 0 }
  0x47   :  { %v121_v8 = vsel %vm281_vm6, 0, %v280_v5 }
  0x48   :  { %v122_v9 = vsub.s32 32, %v121_v8  ;;  %v123_v11 = vshll.u32 %v114_v1, %v121_v8  ;;  %v126_v12 = vsub.s32 4294967266, %v121_v8 }
  0x4a   :  { %v124_v13 = vshrl.u32 %v106_v6, %v122_v9  ;;  %v127_v14 = vadd.s32 127, %v126_v12 }
  0x4c   :  { %v125_v15 = vor.u32 %v124_v13, %v123_v11  ;;  %v128_v16 = vshll.u32 %v127_v14, 23 }
  0x4e   :  { %v129_v17 = vor.u32 4788187, %v128_v16  ;;  %v132_v18 = vcvt.s32.f32 %v125_v15 }
  0x50   :  { %v130_v19 = vand.u32 2147483647, %v129_v17 }
  0x52   :  { %v133_v20 = vmul.f32 %v132_v18, %v130_v19 }
  0x54   :  { %v134_v22 = vxor.u32 2147483648, %v133_v20 }
  0x56   :  { %v135_v23 = vsel %vm52_vm7, %v134_v22, %v133_v20 }
  0x57   :  { %v138_v25 = vsel %vm51_vm8, %v383_v7, %v135_v23 }
  0x58   :  { %298 = vcosq.f32 %v138_v25 }
  0x59   :  { %300 = vsinq.f32 %v138_v25 }
  0x65   :  { %v299_v30 = vpop.eup %298 }
  0x66   :  { %v301_v31 = vpop.eup %300  ;;  %v150_v32 = vxor.u32 2147483648, %v299_v30 }
  0x67   :  { %v147_v10 = vxor.u32 2147483648, %v301_v31 }
  0x68   :  { %v151_v33 = vsel %vm149_vm9, %v150_v32, %v301_v31  ;;  %v254_v34 = vsel %vm252_vm10, %v150_v32, %v301_v31 }
  0x69   :  { %v148_v35 = vsel %vm146_vm11, %v299_v30, %v147_v10  ;;  %v251_v36 = vsel %vm249_vm12, %v299_v30, %v147_v10 }
  0x6a   :  { %v152_v37 = vsel %vm145_vm13, %v148_v35, %v151_v33  ;;  %v255_v38 = vsel %vm248_vm14, %v251_v36, %v254_v34 }
  0x6b   :  { %v153_v39 = vsel %vm142_vm15, nan, %v152_v37  ;;  %v256_v40 = vsel %vm142_vm15, nan, %v255_v38 }
  0x6c   :  { %v257_v42 = vadd.f32 %v256_v40, %v153_v39 }
  0x6e   :  { %v259_v43 = vadd.f32 %v258_v41, %v257_v42 }
  0x70   :  { %260 = vst [vmem:[#allocation5] sm:$0xf] %v259_v43 }
  0x71   :  { %333 = shalt.err (!%p330_p9)
}
  0x72   :  { %270 = dma.vmem_to_hbm [thread:$0]  %s268_s1, 64, %s410_s3, [#allocation4]  }
  0x73   :  { %344 = dma.done.wait [#allocation4], 64  }
  0x74   :  { %345 = vsyncadd [#allocation4], 4294967232 }
  0x75   :  { %274 = vsyncpa [#allocation3], 1 }
  0x76   :  { %275 = vsyncpa [#allocation4], 1 }

</bundles_post_ra>
